<compile_context>
chip_gen: v5e
topology: v5e:2x2
jax: 0.10.0
libtpu: 0.0.40
codegen_flags: <defaults>
</compile_context>

<pallas_src>
import math

import jax
import jax.numpy as jnp
from jax.experimental import pallas as pl
from jax.experimental.pallas import tpu as pltpu


def _get_pad(size: int, multiple: int):
    new_size = math.ceil(size / multiple) * multiple
    pad_size = new_size - size
    pad_left = pad_size // 2
    pad_right = pad_size - pad_left
    return pad_left, pad_right


def _round_up(v: int, m: int) -> int:
    return ((v + m - 1) // m) * m


def _tile_bytes(h: int, w: int, dtype) -> int:
    """VMEM footprint of one (h, w) plane after (sublane, 128) tile round-up."""
    itemsize = jnp.dtype(dtype).itemsize
    sub = {4: 8, 2: 16, 1: 32}.get(itemsize, 8)
    return _round_up(h, sub) * _round_up(w, 128) * itemsize


# Combined (input + output) tile-rounded bytes per grid step.  ~2-4 MiB is
# enough to amortize the ~0.35 us per-step overhead (85%+ of HBM roofline)
# while leaving many grid steps for pipeline overlap and TC sharding.
_TARGET_BLOCK_BYTES = 3 * 1024 * 1024
_MIN_GRID_STEPS = 8  # >= 4 per TensorCore on v7x


def _choose_block_planes(nc: int, per_plane_bytes: int) -> int:
    bnc = max(1, _TARGET_BLOCK_BYTES // per_plane_bytes)
    if nc >= _MIN_GRID_STEPS:
        bnc = min(bnc, max(1, nc // _MIN_GRID_STEPS))
    bnc = int(min(bnc, nc))
    # Prefer a block count that divides NC exactly (no ragged last block whose
    # reads/writes get clipped) -- search a small window below the candidate.
    for cand in range(bnc, max(0, bnc - 16), -1):
        if cand >= 1 and nc % cand == 0:
            return cand
    return bnc


def _make_kernel(H, W, ph_l, ph_r, pw_l, pw_r):
    def kernel(x_ref, o_ref):
        # x_ref : (bnc, H, W)          VMEM
        # o_ref : (bnc, H_new, W_new)  VMEM
        x = x_ref[...]
        bnc = x.shape[0]
        dt = o_ref.dtype
        # Build the padded block as a full-width value and do ONE dense,
        # lane-aligned store (the shifts from the lane-axis concat run on the
        # otherwise-idle XLU slot instead of masked vst.msk stores).
        if pw_l or pw_r:
            parts = []
            if pw_l:
                parts.append(jnp.zeros((bnc, H, pw_l), dt))
            parts.append(x)
            if pw_r:
                parts.append(jnp.zeros((bnc, H, pw_r), dt))
            x = jnp.concatenate(parts, axis=2)
        W_new = W + pw_l + pw_r
        if ph_l or ph_r:
            parts = []
            if ph_l:
                parts.append(jnp.zeros((bnc, ph_l, W_new), dt))
            parts.append(x)
            if ph_r:
                parts.append(jnp.zeros((bnc, ph_r, W_new), dt))
            x = jnp.concatenate(parts, axis=1)
        o_ref[...] = x

    return kernel


def center_padding(x: jax.Array, multiple: int) -> jax.Array:
    """Pallas implementation of CenterPadding.forward for 4-D NCHW input."""
    # TODO(synk): general N-D support; the DINOv2 usage is NCHW.
    N, C, H, W = x.shape
    ph_l, ph_r = _get_pad(H, multiple)
    pw_l, pw_r = _get_pad(W, multiple)

    # No padding needed -> identity (avoid launching a copy kernel).
    if ph_l == 0 and ph_r == 0 and pw_l == 0 and pw_r == 0:
        return x

    H_new = H + ph_l + ph_r
    W_new = W + pw_l + pw_r

    # When the lane (last) dim is < 128 every VMEM tile is mostly empty and a
    # Pallas kernel has no advantage over XLA's fused pad-copy; fall back.
    if W_new < 128:
        return jnp.pad(x, ((0, 0), (0, 0), (ph_l, ph_r), (pw_l, pw_r)))

    NC = N * C
    x_flat = x.reshape(NC, H, W)

    per_plane = _tile_bytes(H, W, x.dtype) + _tile_bytes(H_new, W_new, x.dtype)
    bnc = _choose_block_planes(NC, per_plane)
    grid = (pl.cdiv(NC, bnc),)

    # Double-buffered (in+out) blocks plus headroom; conservative for v7x's
    # 64 MiB-per-TC VMEM, plenty of room on v5e / v6e.
    vmem_limit = int(min(32 * 1024 * 1024,
                         max(16 * 1024 * 1024,
                             2 * bnc * per_plane + 4 * 1024 * 1024)))

    itemsize = jnp.dtype(x.dtype).itemsize
    bytes_accessed = int(NC * (H * W + H_new * W_new) * itemsize)

    out_flat = pl.pallas_call(
        _make_kernel(H, W, ph_l, ph_r, pw_l, pw_r),
        out_shape=jax.ShapeDtypeStruct((NC, H_new, W_new), x.dtype),
        grid_spec=pltpu.PrefetchScalarGridSpec(
            num_scalar_prefetch=0,
            grid=grid,
            in_specs=[pl.BlockSpec((bnc, H, W), lambda i: (i, 0, 0))],
            out_specs=pl.BlockSpec((bnc, H_new, W_new), lambda i: (i, 0, 0)),
        ),
        compiler_params=pltpu.CompilerParams(
            dimension_semantics=("parallel",),
            vmem_limit_bytes=vmem_limit,
        ),
        cost_estimate=pl.CostEstimate(
            flops=0, transcendentals=0, bytes_accessed=bytes_accessed),
    )(x_flat)

    return out_flat.reshape(N, C, H_new, W_new)


if __name__ == "__main__":
    multiple = 14  # DINOv2 patch size
    key = jax.random.PRNGKey(0)
    k1, k2 = jax.random.split(key)

    # Case 1: small spatial dims (W_new < 128) -> XLA fallback path.
    x_small = jax.random.normal(k1, (2, 4, 16, 16), dtype=jnp.float32)
    out_small = jax.block_until_ready(center_padding(x_small, multiple))
    hl, hr = _get_pad(16, multiple)
    wl, wr = _get_pad(16, multiple)
    ref_small = jnp.pad(x_small, ((0, 0), (0, 0), (hl, hr), (wl, wr)))
    assert out_small.shape == ref_small.shape, (out_small.shape, ref_small.shape)
    assert out_small.dtype == x_small.dtype
    assert jnp.array_equal(out_small, ref_small), "fallback mismatch vs reference"

    # Case 2: spatial dims large enough (W_new >= 128) to exercise the kernel.
    x_big = jax.random.normal(k2, (2, 4, 130, 130), dtype=jnp.float32)
    out_big = jax.block_until_ready(center_padding(x_big, multiple))
    hl, hr = _get_pad(130, multiple)
    wl, wr = _get_pad(130, multiple)
    ref_big = jnp.pad(x_big, ((0, 0), (0, 0), (hl, hr), (wl, wr)))
    assert out_big.shape == ref_big.shape, (out_big.shape, ref_big.shape)
    assert out_big.dtype == x_big.dtype
    assert jnp.array_equal(out_big, ref_big), "kernel mismatch vs reference"

    print("KERNEL_OK")
</pallas_src>

<mosaic_0001>
module attributes {stable_mosaic.version = 11 : i64} {
  func.func @kernel(%arg0: i32, %arg1: memref<1x130x130xf32, #tpu.memory_space<vmem>>, %arg2: memref<1x140x140xf32, #tpu.memory_space<vmem>>) attributes {dimension_semantics = [#tpu.dimension_semantics<parallel>], iteration_bounds = array<i64: 8>, scalar_prefetch = 0 : i64, scratch_operands = 0 : i64, tpu.core_type = #tpu.core_type<tc>, window_params = [{transform_indices = @transform_0, window_bounds = array<i64: 1, 130, 130>}, {transform_indices = @transform_1, window_bounds = array<i64: 1, 140, 140>}]} {
    %c0 = arith.constant 0 : index
    %c0_0 = arith.constant 0 : index
    %c0_1 = arith.constant 0 : index
    %0 = vector.load %arg1[%c0, %c0_0, %c0_1] : memref<1x130x130xf32, #tpu.memory_space<vmem>>, vector<1x130x130xf32>
    %cst = arith.constant 0.000000e+00 : f32
    %1 = vector.broadcast %cst : f32 to vector<1x130x5xf32>
    %cst_2 = arith.constant 0.000000e+00 : f32
    %2 = vector.broadcast %cst_2 : f32 to vector<1x130x5xf32>
    %3 = tpu.concatenate %1, %0, %2 in 2 : vector<1x130x5xf32>, vector<1x130x130xf32>, vector<1x130x5xf32> -> vector<1x130x140xf32>
    %cst_3 = arith.constant 0.000000e+00 : f32
    %4 = vector.broadcast %cst_3 : f32 to vector<1x5x140xf32>
    %cst_4 = arith.constant 0.000000e+00 : f32
    %5 = vector.broadcast %cst_4 : f32 to vector<1x5x140xf32>
    %6 = tpu.concatenate %4, %3, %5 in 1 : vector<1x5x140xf32>, vector<1x130x140xf32>, vector<1x5x140xf32> -> vector<1x140x140xf32>
    %c0_5 = arith.constant 0 : index
    %c0_6 = arith.constant 0 : index
    %c0_7 = arith.constant 0 : index
    %7 = vector.load %arg2[%c0_5, %c0_6, %c0_7] : memref<1x140x140xf32, #tpu.memory_space<vmem>>, vector<1x140x140xf32>
    tpu.vector_store %arg2[%c0_5, %c0_6, %c0_7], %6 {strides = array<i32>} : memref<1x140x140xf32, #tpu.memory_space<vmem>>, vector<1x140x140xf32>,
    return
  }
  func.func @transform_0(%arg0: i32) -> (i32, i32, i32) {
    %c0_i32 = arith.constant 0 : i32
    %c0_i32_0 = arith.constant 0 : i32
    %c0_i32_1 = arith.constant 0 : i32
    return %arg0, %c0_i32, %c0_i32_0 : i32, i32, i32
  }
  func.func @transform_1(%arg0: i32) -> (i32, i32, i32) {
    %c0_i32 = arith.constant 0 : i32
    %c0_i32_0 = arith.constant 0 : i32
    %c0_i32_1 = arith.constant 0 : i32
    return %arg0, %c0_i32, %c0_i32_0 : i32, i32, i32
  }
}

</mosaic_0001>

<bundles_post_ra>
// kernel: tpu_custom_call.1
= control target key start
LH: loop header
LB: loop body
LE: loop exit
PB: predicated region body
PF: predicated region fallthrough
CT: control target
= control target key end

     0   :  { %s614_s6 = smov 0   ;;  %s871_s0 = inlined_call_operand.vmem [shape: f32[8,130,130], index: 0, kind: input, shape index: {}]   ;;  %s872_s1 = inlined_call_operand.vmem [shape: f32[8,140,140], index: 1, kind: output, shape index: {}]  }
   0x1 LB: > { %s573_s7 = sadd.s32 4294967295, %s600_s6   ;;  %p577_p0 = scmp.ge.s32.totalorder %s600_s6, 1  ;;  %s600_s6 = sphi %s614_s6, %s11_s6  }
   0x2   : > { %p87_p1 = scmp.lt.s32.totalorder %s600_s6, 9 }
   0x4   : > { %p88_p2 = pnand %p577_p0, %p87_p1 }
   0x5   : > { %p107_p3 = scmp.lt.s32.totalorder (!%p88_p2), %s573_s7, 7  ;;  %s602_s12 = smov (!%p88_p2), 5  }
   0x6   : > { %91 = sbr.rel (%p88_p2) target bundleno = 227 (0xe3), region = 24 }
   0xb   : > { %s874_s7 = smov (!%p107_p3, %s573_s7), 7  ;;  %vm253_vm0 = vcmask 39936   ;;  %vm374_vm1 = vcmask 1044480   ;;  %vm322_vm2 = vcmask 56320   ;;  %vm481_vm3 = vcmask 97280  }
   0xc   : > { %s582_s8 = smul.u32 272, %s874_s7  ;;  %vm477_vm4 = vcmask 1046528   ;;  %vm516_vm5 = vcmask 93184  }
   0xd   : > { %s583_s13 = smul.u32 288, %s874_s7 }
   0xe   : > { %s628_s11 = scalar_lea.vmem %s871_s0, %s582_s8 }
   0xf   : > { %v121_v0 = vld [vmem:[%s628_s11 + $0x20] sm:$0xff]  ;;  %v119_v1 = vld [vmem:[%s628_s11 + $0x10] sm:$0xff]  ;;  %v122_v3 = vld [vmem:[%s628_s11 + $0x28] sm:$0xff]  ;;  %s707_s16 = scalar_lea.vmem %s872_s1, %s583_s13 }
  0x10   : > { %v117_v2 = vld [vmem:[%s628_s11] sm:$0xff]  ;;  %193 = vrot.lane.b32.xlu2 %v121_v0, %s602_s12  ;;  %189 = vrot.lane.b32.xlu1 %v119_v1, %s602_s12  ;;  %v120_v4 = vld [vmem:[%s628_s11 + $0x18] sm:$0xff] }
  0x11   : > { %185 = vrot.lane.b32.xlu0 %v117_v2, %s602_s12  ;;  %v118_v5 = vld [vmem:[%s628_s11 + $0x8] sm:$0xff]  ;;  %v125_v6 = vld [vmem:[%s628_s11 + $0x40] sm:$0xff]  ;;  %v124_v7 = vld [vmem:[%s628_s11 + $0x38] sm:$0xff] }
  0x12   : > { %v123_v8 = vld [vmem:[%s628_s11 + $0x30] sm:$0xff]  ;;  %v128_v9 = vld [vmem:[%s628_s11 + $0x58] sm:$0xff]  ;;  %v126_v11 = vld [vmem:[%s628_s11 + $0x48] sm:$0xff] }
  0x13   : > { %v127_v10 = vld [vmem:[%s628_s11 + $0x50] sm:$0xff]  ;;  %v130_v13 = vld [vmem:[%s628_s11 + $0x68] sm:$0xff]  ;;  %v129_v14 = vld [vmem:[%s628_s11 + $0x60] sm:$0xff] }
  0x14   : > { %v131_v12 = vld [vmem:[%s628_s11 + $0x70] sm:$0xff]  ;;  %v134_v15 = vld [vmem:[%s628_s11 + $0x88] sm:$0xff]  ;;  %v133_v16 = vld [vmem:[%s628_s11 + $0x80] sm:$0xff] }
  0x15   : > { %v132_v17 = vld [vmem:[%s628_s11 + $0x78] sm:$0xff]  ;;  %v147_v19 = vld [vmem:[%s628_s11 + $0xf0] sm:$0xff]  ;;  %v150_v22 = vld [vmem:[%s628_s11 + $0x108] sm:$0x3] }
  0x16   : > { %v148_v18 = vld [vmem:[%s628_s11 + $0xf8] sm:$0xff]  ;;  %v135_v20 = vld [vmem:[%s628_s11 + $0x90] sm:$0xff]  ;;  %v149_v23 = vld [vmem:[%s628_s11 + $0x100] sm:$0x3] }
  0x17   : > { %v136_v21 = vld [vmem:[%s628_s11 + $0x98] sm:$0xff]  ;;  %v139_v24 = vld [vmem:[%s628_s11 + $0xb0] sm:$0xff]  ;;  %v138_v25 = vld [vmem:[%s628_s11 + $0xa8] sm:$0xff] }
  0x18   : > { %195 = vrot.lane.b32.xlu2 %v122_v3, %s602_s12  ;;  %191 = vrot.lane.b32.xlu1 %v120_v4, %s602_s12  ;;  %v137_v26 = vld [vmem:[%s628_s11 + $0xa0] sm:$0xff]  ;;  %v142_v27 = vld [vmem:[%s628_s11 + $0xc8] sm:$0xff] }
  0x19   : > { %187 = vrot.lane.b32.xlu0 %v118_v5, %s602_s12  ;;  %v141_v28 = vld [vmem:[%s628_s11 + $0xc0] sm:$0xff]  ;;  %v140_v29 = vld [vmem:[%s628_s11 + $0xb8] sm:$0xff]  ;;  %v143_v32 = vld [vmem:[%s628_s11 + $0xd0] sm:$0xff] }
  0x1a   : > { %v145_v30 = vld [vmem:[%s628_s11 + $0xe0] sm:$0xff]  ;;  %v144_v31 = vld [vmem:[%s628_s11 + $0xd8] sm:$0xff]  ;;  %v146_v33 = vld [vmem:[%s628_s11 + $0xe8] sm:$0xff] }
  0x20   : > { %201 = vrot.lane.b32.xlu2 %v125_v6, %s602_s12  ;;  %199 = vrot.lane.b32.xlu1 %v124_v7, %s602_s12 }
  0x21   : > { %197 = vrot.lane.b32.xlu0 %v123_v8, %s602_s12 }
  0x28   : > { %207 = vrot.lane.b32.xlu2 %v128_v9, %s602_s12  ;;  %205 = vrot.lane.b32.xlu1 %v127_v10, %s602_s12 }
  0x29   : > { %203 = vrot.lane.b32.xlu0 %v126_v11, %s602_s12 }
  0x30   : > { %213 = vrot.lane.b32.xlu2 %v131_v12, %s602_s12  ;;  %211 = vrot.lane.b32.xlu1 %v130_v13, %s602_s12 }
  0x31   : > { %209 = vrot.lane.b32.xlu0 %v129_v14, %s602_s12 }
  0x38   : > { %219 = vrot.lane.b32.xlu2 %v134_v15, %s602_s12  ;;  %217 = vrot.lane.b32.xlu1 %v133_v16, %s602_s12 }
  0x39   : > { %215 = vrot.lane.b32.xlu0 %v132_v17, %s602_s12 }
  0x40   : > { %247 = vrot.lane.b32.xlu2 %v148_v18, %s602_s12  ;;  %245 = vrot.lane.b32.xlu1 %v147_v19, %s602_s12 }
  0x41   : > { %221 = vrot.lane.b32.xlu0 %v135_v20, %s602_s12 }
  0x48   : > { %223 = vrot.lane.b32.xlu2 %v136_v21, %s602_s12  ;;  %251 = vrot.lane.b32.xlu1 %v150_v22, %s602_s12 }
  0x49   : > { %249 = vrot.lane.b32.xlu0 %v149_v23, %s602_s12 }
  0x50   : > { %229 = vrot.lane.b32.xlu2 %v139_v24, %s602_s12  ;;  %227 = vrot.lane.b32.xlu1 %v138_v25, %s602_s12 }
  0x51   : > { %225 = vrot.lane.b32.xlu0 %v137_v26, %s602_s12 }
  0x58   : > { %235 = vrot.lane.b32.xlu2 %v142_v27, %s602_s12  ;;  %233 = vrot.lane.b32.xlu1 %v141_v28, %s602_s12 }
  0x59   : > { %231 = vrot.lane.b32.xlu0 %v140_v29, %s602_s12 }
  0x60   : > { %241 = vrot.lane.b32.xlu2 %v145_v30, %s602_s12  ;;  %239 = vrot.lane.b32.xlu1 %v144_v31, %s602_s12 }
  0x61   : > { %237 = vrot.lane.b32.xlu0 %v143_v32, %s602_s12 }
  0x69   : > { %243 = vrot.lane.b32.xlu0 %v146_v33, %s602_s12 }
  0x6a   : > { %v194_v34 = vpop.permute.xlu2 %193 }
  0x6b   : > { %v307_v37 = vsel %vm253_vm0, 0.0, %v194_v34 }
  0x6c   : > { %v381_v38 = vrot.slane %v307_v37, 3 }
  0x72   : > { %v196_v35 = vpop.permute.xlu2 %195 }
  0x73   : > { %v256_v45 = vsel %vm253_vm0, %v194_v34, %v196_v35 }
  0x74   : > { %v325_v50 = vsel %vm322_vm2, %v256_v45, 0.0 }
  0x75   : > { %v383_v53 = vrot.slane %v325_v50, 3 }
  0x7a   : > { %v698_v36 = vpop.permute.xlu2 %201 }
  0x7b   : > { %v309_v62 = vsel %vm253_vm0, 0.0, %v698_v36 }
  0x7c   : > { %v389_v3 = vrot.slane %v309_v62, 3 }
  0x82   : > { %v208_v39 = vpop.permute.xlu2 %207  ;;  %v190_v40 = vpop.permute.xlu1 %189 }
  0x83   : > { %v306_v41 = vsel %vm253_vm0, 0.0, %v190_v40  ;;  %v186_v42 = vpop.permute.xlu0 %185 }
  0x84   : > { %v377_v43 = vrot.slane %v306_v41, 3  ;;  %v305_v44 = vsel %vm253_vm0, 0.0, %v186_v42 }
  0x85   : > { %v375_v46 = vrot.slane %v305_v44, 3 }
  0x86   : > { %v382_v47 = vsel %vm374_vm1, %v377_v43, %v381_v38 }
  0x87   : > { %485 = vst [vmem:[%s707_s16 + $0x20] sm:$0xff] %v382_v47  ;;  %v378_v48 = vsel %vm374_vm1, %v375_v46, %v377_v43  ;;  %v475_v49 = vsel %vm374_vm1, 0.0, %v375_v46 }
  0x88   : > { %480 = vst [vmem:[%s707_s16] sm:$0xff] %v475_v49 }
  0x89   : > { %483 = vst [vmem:[%s707_s16 + $0x10] sm:$0xff] %v378_v48 }
  0x8a   : > { %v717_v51 = vpop.permute.xlu2 %213  ;;  %v192_v52 = vpop.permute.xlu1 %191 }
  0x8b   : > { %v255_v54 = vsel %vm253_vm0, %v190_v40, %v192_v52  ;;  %v188_v55 = vpop.permute.xlu0 %187  ;;  %v312_v25 = vsel %vm253_vm0, 0.0, %v717_v51 }
  0x8c   : > { %v324_v56 = vsel %vm322_vm2, %v255_v54, 0.0  ;;  %v254_v57 = vsel %vm253_vm0, %v186_v42, %v188_v55  ;;  %v401_v30 = vrot.slane %v312_v25, 3 }
  0x8d   : > { %v379_v58 = vrot.slane %v324_v56, 3  ;;  %v323_v59 = vsel %vm322_vm2, %v254_v57, 0.0 }
  0x8e   : > { %v376_v60 = vrot.slane %v323_v59, 3 }
  0x8f   : > { %v384_v61 = vsel %vm374_vm1, %v379_v58, %v383_v53 }
  0x90   : > { %486 = vst.msk [vmem:[%s707_s16 + $0x28] sm:$0xff] %vm481_vm3, %v384_v61  ;;  %v380_v63 = vsel %vm374_vm1, %v376_v60, %v379_v58  ;;  %v476_v0 = vsel %vm374_vm1, 0.0, %v376_v60 }
  0x91   : > { %482 = vst.msk [vmem:[%s707_s16 + $0x8] sm:$0xff] %vm481_vm3, %v476_v0 }
  0x92   : > { %484 = vst.msk [vmem:[%s707_s16 + $0x18] sm:$0xff] %vm481_vm3, %v380_v63  ;;  %v220_v1 = vpop.permute.xlu2 %219  ;;  %v200_v2 = vpop.permute.xlu1 %199 }
  0x93   : > { %v198_v4 = vpop.permute.xlu0 %197 }
  0x94   : > { %v257_v5 = vsel %vm253_vm0, %v198_v4, %v200_v2  ;;  %v308_v6 = vsel %vm253_vm0, 0.0, %v198_v4 }
  0x95   : > { %v326_v7 = vsel %vm322_vm2, %v257_v5, 0.0  ;;  %v385_v8 = vrot.slane %v308_v6, 3 }
  0x96   : > { %v387_v9 = vrot.slane %v326_v7, 3 }
  0x97   : > { %v386_v10 = vsel %vm374_vm1, %v381_v38, %v385_v8  ;;  %v390_v11 = vsel %vm374_vm1, %v385_v8, %v389_v3 }
  0x98   : > { %v388_v12 = vsel %vm374_vm1, %v383_v53, %v387_v9  ;;  %487 = vst [vmem:[%s707_s16 + $0x30] sm:$0xff] %v386_v10 }
  0x99   : > { %488 = vst.msk [vmem:[%s707_s16 + $0x38] sm:$0xff] %vm481_vm3, %v388_v12 }
  0x9a   : > { %489 = vst [vmem:[%s707_s16 + $0x40] sm:$0xff] %v390_v11  ;;  %v248_v13 = vpop.permute.xlu2 %247  ;;  %v206_v14 = vpop.permute.xlu1 %205 }
  0x9b   : > { %v259_v15 = vsel %vm253_vm0, %v206_v14, %v208_v39  ;;  %v310_v16 = vsel %vm253_vm0, 0.0, %v206_v14  ;;  %v204_v17 = vpop.permute.xlu0 %203 }
  0x9c   : > { %v328_v18 = vsel %vm322_vm2, %v259_v15, 0.0  ;;  %v393_v19 = vrot.slane %v310_v16, 3  ;;  %v258_v20 = vsel %vm253_vm0, %v698_v36, %v204_v17 }
  0x9d   : > { %v395_v21 = vrot.slane %v328_v18, 3  ;;  %v327_v22 = vsel %vm322_vm2, %v258_v20, 0.0 }
  0x9e   : > { %v394_v23 = vsel %vm374_vm1, %v389_v3, %v393_v19  ;;  %v391_v24 = vrot.slane %v327_v22, 3 }
  0x9f   : > { %491 = vst [vmem:[%s707_s16 + $0x50] sm:$0xff] %v394_v23 }
  0xa0   : > { %v392_v26 = vsel %vm374_vm1, %v387_v9, %v391_v24  ;;  %v396_v27 = vsel %vm374_vm1, %v391_v24, %v395_v21  ;;  %v603_v24 = vmov 0.0  }
  0xa1   : > { %490 = vst.msk [vmem:[%s707_s16 + $0x48] sm:$0xff] %vm481_vm3, %v392_v26 }
  0xa2   : > { %492 = vst.msk [vmem:[%s707_s16 + $0x58] sm:$0xff] %vm481_vm3, %v396_v27  ;;  %v224_v28 = vpop.permute.xlu2 %223  ;;  %v212_v29 = vpop.permute.xlu1 %211 }
  0xa3   : > { %v210_v31 = vpop.permute.xlu0 %209  ;;  %515 = vst [vmem:[%s707_s16 + $0x110] sm:$0xf] %v603_v24 }
  0xa4   : > { %v260_v32 = vsel %vm253_vm0, %v210_v31, %v212_v29  ;;  %v311_v33 = vsel %vm253_vm0, 0.0, %v210_v31  ;;  %517 = vst.msk [vmem:[%s707_s16 + $0x118] sm:$0xf] %vm516_vm5, %v603_v24 }
  0xa5   : > { %v329_v34 = vsel %vm322_vm2, %v260_v32, 0.0  ;;  %v397_v35 = vrot.slane %v311_v33, 3 }
  0xa6   : > { %v399_v36 = vrot.slane %v329_v34, 3 }
  0xa7   : > { %v398_v37 = vsel %vm374_vm1, %v393_v19, %v397_v35  ;;  %v402_v38 = vsel %vm374_vm1, %v397_v35, %v401_v30 }
  0xa8   : > { %v400_v39 = vsel %vm374_vm1, %v395_v21, %v399_v36  ;;  %493 = vst [vmem:[%s707_s16 + $0x60] sm:$0xff] %v398_v37 }
  0xa9   : > { %494 = vst.msk [vmem:[%s707_s16 + $0x68] sm:$0xff] %vm481_vm3, %v400_v39 }
  0xaa   : > { %495 = vst [vmem:[%s707_s16 + $0x70] sm:$0xff] %v402_v38  ;;  %v770_v40 = vpop.permute.xlu2 %229  ;;  %v218_v41 = vpop.permute.xlu1 %217 }
  0xab   : > { %v262_v42 = vsel %vm253_vm0, %v218_v41, %v220_v1  ;;  %v313_v43 = vsel %vm253_vm0, 0.0, %v218_v41  ;;  %v216_v44 = vpop.permute.xlu0 %215  ;;  %v316_v17 = vsel %vm253_vm0, 0.0, %v770_v40 }
  0xac   : > { %v331_v45 = vsel %vm322_vm2, %v262_v42, 0.0  ;;  %v405_v46 = vrot.slane %v313_v43, 3  ;;  %v261_v47 = vsel %vm253_vm0, %v717_v51, %v216_v44  ;;  %v417_v22 = vrot.slane %v316_v17, 3 }
  0xad   : > { %v407_v48 = vrot.slane %v331_v45, 3  ;;  %v330_v49 = vsel %vm322_vm2, %v261_v47, 0.0 }
  0xae   : > { %v406_v50 = vsel %vm374_vm1, %v401_v30, %v405_v46  ;;  %v403_v52 = vrot.slane %v330_v49, 3 }
  0xaf   : > { %497 = vst [vmem:[%s707_s16 + $0x80] sm:$0xff] %v406_v50 }
  0xb0   : > { %v404_v53 = vsel %vm374_vm1, %v399_v36, %v403_v52  ;;  %v408_v54 = vsel %vm374_vm1, %v403_v52, %v407_v48 }
  0xb1   : > { %496 = vst.msk [vmem:[%s707_s16 + $0x78] sm:$0xff] %vm481_vm3, %v404_v53 }
  0xb2   : > { %498 = vst.msk [vmem:[%s707_s16 + $0x88] sm:$0xff] %vm481_vm3, %v408_v54  ;;  %v236_v55 = vpop.permute.xlu2 %235  ;;  %v246_v56 = vpop.permute.xlu1 %245 }
  0xb3   : > { %v222_v51 = vpop.permute.xlu0 %221  ;;  %v269_v61 = vsel %vm253_vm0, %v246_v56, %v248_v13  ;;  %v320_v63 = vsel %vm253_vm0, 0.0, %v246_v56 }
  0xb4   : > { %v263_v57 = vsel %vm253_vm0, %v222_v51, %v224_v28  ;;  %v314_v58 = vsel %vm253_vm0, 0.0, %v222_v51  ;;  %v795_v2 = vsel %vm322_vm2, %v269_v61, 0.0  ;;  %v433_v3 = vrot.slane %v320_v63, 3 }
  0xb5   : > { %v332_v59 = vsel %vm322_vm2, %v263_v57, 0.0  ;;  %v409_v60 = vrot.slane %v314_v58, 3  ;;  %v435_v8 = vrot.slane %v795_v2, 3 }
  0xb6   : > { %v411_v62 = vrot.slane %v332_v59, 3 }
  0xb7   : > { %v410_v0 = vsel %vm374_vm1, %v405_v46, %v409_v60 }
  0xb8   : > { %v412_v1 = vsel %vm374_vm1, %v407_v48, %v411_v62  ;;  %499 = vst [vmem:[%s707_s16 + $0x90] sm:$0xff] %v410_v0 }
  0xb9   : > { %500 = vst.msk [vmem:[%s707_s16 + $0x98] sm:$0xff] %vm481_vm3, %v412_v1 }
  0xba   : > { %v799_v4 = vpop.permute.xlu2 %241  ;;  %v252_v5 = vpop.permute.xlu1 %251 }
  0xbb   : > { %v803_v6 = vsel %vm253_vm0, 0.0, %v799_v4  ;;  %v250_v7 = vpop.permute.xlu0 %249 }
  0xbc   : > { %v429_v9 = vrot.slane %v803_v6, 3  ;;  %v270_v10 = vsel %vm253_vm0, %v250_v7, %v252_v5  ;;  %v321_v11 = vsel %vm253_vm0, 0.0, %v250_v7 }
  0xbd   : > { %v339_v12 = vsel %vm322_vm2, %v270_v10, 0.0  ;;  %v437_v13 = vrot.slane %v321_v11, 3 }
  0xbe   : > { %v434_v14 = vsel %vm374_vm1, %v429_v9, %v433_v3  ;;  %v439_v15 = vrot.slane %v339_v12, 3 }
  0xbf   : > { %511 = vst [vmem:[%s707_s16 + $0xf0] sm:$0xff] %v434_v14  ;;  %v438_v16 = vsel %vm374_vm1, %v433_v3, %v437_v13 }
  0xc0   : > { %v440_v18 = vsel %vm374_vm1, %v435_v8, %v439_v15  ;;  %v478_v19 = vsel %vm477_vm4, %v438_v16, 0.0 }
  0xc1   : > { %v479_v20 = vsel %vm477_vm4, %v440_v18, 0.0  ;;  %513 = vst [vmem:[%s707_s16 + $0x100] sm:$0xff] %v478_v19 }
  0xc2   : > { %514 = vst.msk [vmem:[%s707_s16 + $0x108] sm:$0xff] %vm481_vm3, %v479_v20  ;;  %v228_v21 = vpop.permute.xlu1 %227 }
  0xc3   : > { %v226_v23 = vpop.permute.xlu0 %225 }
  0xc4   : > { %v264_v25 = vsel %vm253_vm0, %v226_v23, %v228_v21  ;;  %v315_v26 = vsel %vm253_vm0, 0.0, %v226_v23 }
  0xc5   : > { %v333_v27 = vsel %vm322_vm2, %v264_v25, 0.0  ;;  %v413_v28 = vrot.slane %v315_v26, 3 }
  0xc6   : > { %v415_v29 = vrot.slane %v333_v27, 3 }
  0xc7   : > { %v414_v30 = vsel %vm374_vm1, %v409_v60, %v413_v28  ;;  %v418_v31 = vsel %vm374_vm1, %v413_v28, %v417_v22 }
  0xc8   : > { %v416_v32 = vsel %vm374_vm1, %v411_v62, %v415_v29  ;;  %501 = vst [vmem:[%s707_s16 + $0xa0] sm:$0xff] %v414_v30 }
  0xc9   : > { %502 = vst.msk [vmem:[%s707_s16 + $0xa8] sm:$0xff] %vm481_vm3, %v416_v32 }
  0xca   : > { %503 = vst [vmem:[%s707_s16 + $0xb0] sm:$0xff] %v418_v31  ;;  %v234_v33 = vpop.permute.xlu1 %233 }
  0xcb   : > { %v266_v34 = vsel %vm253_vm0, %v234_v33, %v236_v55  ;;  %v317_v35 = vsel %vm253_vm0, 0.0, %v234_v33  ;;  %v232_v36 = vpop.permute.xlu0 %231 }
  0xcc   : > { %v335_v37 = vsel %vm322_vm2, %v266_v34, 0.0  ;;  %v421_v38 = vrot.slane %v317_v35, 3  ;;  %v265_v39 = vsel %vm253_vm0, %v770_v40, %v232_v36 }
  0xcd   : > { %v423_v41 = vrot.slane %v335_v37, 3  ;;  %v334_v42 = vsel %vm322_vm2, %v265_v39, 0.0 }
  0xce   : > { %v422_v43 = vsel %vm374_vm1, %v417_v22, %v421_v38  ;;  %v419_v44 = vrot.slane %v334_v42, 3 }
  0xcf   : > { %505 = vst [vmem:[%s707_s16 + $0xc0] sm:$0xff] %v422_v43 }
  0xd0   : > { %v420_v45 = vsel %vm374_vm1, %v415_v29, %v419_v44  ;;  %v424_v46 = vsel %vm374_vm1, %v419_v44, %v423_v41 }
  0xd1   : > { %504 = vst.msk [vmem:[%s707_s16 + $0xb8] sm:$0xff] %vm481_vm3, %v420_v45 }
  0xd2   : > { %506 = vst.msk [vmem:[%s707_s16 + $0xc8] sm:$0xff] %vm481_vm3, %v424_v46  ;;  %v240_v47 = vpop.permute.xlu1 %239 }
  0xd3   : > { %v238_v40 = vpop.permute.xlu0 %237 }
  0xd4   : > { %v267_v48 = vsel %vm253_vm0, %v238_v40, %v240_v47  ;;  %v318_v49 = vsel %vm253_vm0, 0.0, %v238_v40 }
  0xd5   : > { %v336_v50 = vsel %vm322_vm2, %v267_v48, 0.0  ;;  %v425_v52 = vrot.slane %v318_v49, 3 }
  0xd6   : > { %v427_v53 = vrot.slane %v336_v50, 3 }
  0xd7   : > { %v426_v54 = vsel %vm374_vm1, %v421_v38, %v425_v52  ;;  %v430_v55 = vsel %vm374_vm1, %v425_v52, %v429_v9 }
  0xd8   : > { %v428_v56 = vsel %vm374_vm1, %v423_v41, %v427_v53  ;;  %507 = vst [vmem:[%s707_s16 + $0xd0] sm:$0xff] %v426_v54 }
  0xd9   : > { %508 = vst.msk [vmem:[%s707_s16 + $0xd8] sm:$0xff] %vm481_vm3, %v428_v56 }
  0xda   : > { %509 = vst [vmem:[%s707_s16 + $0xe0] sm:$0xff] %v430_v55 }
  0xdb   : > { %v244_v51 = vpop.permute.xlu0 %243 }
  0xdc   : > { %v268_v57 = vsel %vm253_vm0, %v799_v4, %v244_v51 }
  0xdd   : > { %v337_v58 = vsel %vm322_vm2, %v268_v57, 0.0 }
  0xde   : > { %v431_v59 = vrot.slane %v337_v58, 3 }
  0xe0   : > { %v432_v60 = vsel %vm374_vm1, %v427_v53, %v431_v59  ;;  %v436_v61 = vsel %vm374_vm1, %v431_v59, %v435_v8 }
  0xe1   : > { %510 = vst.msk [vmem:[%s707_s16 + $0xe8] sm:$0xff] %vm481_vm3, %v432_v60 }
  0xe2   : > { %512 = vst.msk [vmem:[%s707_s16 + $0xf8] sm:$0xff] %vm481_vm3, %v436_v61 }
  0xe3 PF: > { %s11_s6 = sadd.s32 1, %s600_s6  }
  0xe4   : > { %p8_p4 = scmp.ge.s32.totalorder %s11_s6, 10  }
  0xe6   :  { %10 = sbr.rel (!%p8_p4) target bundleno = 1 (0x1), region = 54 }

</bundles_post_ra>
